<compile_context>
chip_gen: v6e
topology: v6e:2x2x1
jax: 0.10.0
libtpu: 0.0.40
codegen_flags: <defaults>
</compile_context>

<pallas_src>
import functools

import jax
import jax.numpy as jnp
from jax.experimental import pallas as pl
from jax.experimental.pallas import tpu as pltpu

PAD_IDX = 0
SEP_IDX = 1
EOS_IDX = 2


# ----------------------------------------------------------------------------
# Fused kernel: per-row splittable reduction + keep-row select + both one-hots,
# emitted in a lane-dense (tB, N_pad) layout.  spread / cls are grid-invariant
# inputs (constant block index -> DMA'd once).
# ----------------------------------------------------------------------------
def _combiner_kernel(x_ref, so_ref, ext_ref, spread_ref, cls_ref,
                     out_ref, expr_ref, split_ref, *,
                     pad_idx, sep_idx, eos_idx):
    x = x_ref[...]                                   # (tB, S) int32
    so = so_ref[...]                                 # (tB, S) int32
    ext = ext_ref[...]                               # (tB, 1) int32: final | ~well_formed
    tB, S = x.shape

    # ---------------- per-row reductions on solver_out (splittable) ----------
    pos = jax.lax.broadcasted_iota(jnp.int32, (tB, S), 1)
    is_eos = so == eos_idx
    is_sep = so == sep_idx
    eos_count = jnp.sum(is_eos.astype(jnp.int32), axis=1, keepdims=True)
    first_eos = jnp.min(jnp.where(is_eos, pos, S), axis=1, keepdims=True)
    sep_before = jnp.sum(jnp.logical_and(is_sep, pos < first_eos).astype(jnp.int32),
                         axis=1, keepdims=True)
    splittable = jnp.logical_and(eos_count >= 1, sep_before == 1)    # (tB, 1) bool
    split_ref[...] = splittable.astype(jnp.int32)

    # keep row from X iff final | ~splittable | ~well_formed (reference overwrites)
    keep = jnp.logical_or(ext > 0, jnp.logical_not(splittable))      # (tB, 1) bool
    # first SEP position (== expression length in _split); S if no SEP
    first_sep = jnp.min(jnp.where(is_sep, pos, S), axis=1, keepdims=True)

    # ---------------- pre-matmul masking on the small (tB, S) token tiles ----
    # output tokens: X where kept, PAD elsewhere (PAD one-hots to pad_idx,
    # matching the reference _to_1hot(output)).
    x_keep = jnp.where(keep, x, pad_idx)                              # (tB, S)
    # expression tokens: solver_out strictly before first SEP and != PAD;
    # -1 sentinel elsewhere -> never matches any class -> all-zero row.
    expr_ok = jnp.logical_and(pos < first_sep, so != pad_idx)
    expr_tok = jnp.where(expr_ok, so, -1)                             # (tB, S)

    # ---------------- lane-dense one-hot via MXU token spread ----------------
    # spread[s, j] = 1 iff j // vocab == s, so (tok @ spread)[b, j] == tok[b, j//vocab]
    spread = spread_ref[...]                                          # (S, N_pad) bf16/f32
    cls = cls_ref[...]                                                # (1, N_pad) f32
    x_rep = jnp.dot(x_keep.astype(spread.dtype), spread,
                    preferred_element_type=jnp.float32)               # (tB, N_pad)
    e_rep = jnp.dot(expr_tok.astype(spread.dtype), spread,
                    preferred_element_type=jnp.float32)               # (tB, N_pad)

    # exact integer equality in f32 -> single vcmp + cast per output element
    out_ref[...] = (x_rep == cls).astype(out_ref.dtype)
    expr_ref[...] = (e_rep == cls).astype(expr_ref.dtype)


# ----------------------------------------------------------------------------
# Generation-aware sizing.
# ----------------------------------------------------------------------------
def _vmem_limits():
    """(tile budget bytes, pallas vmem_limit_bytes), sized from physical VMEM.
    v5e/v6e (128 MiB) -> ~80 MiB limit; v7x (64 MiB) -> ~40 MiB limit."""
    try:
        cap = int(pltpu.get_tpu_info().vmem_capacity_bytes)
    except Exception:
        cap = 64 * 1024 * 1024        # assume the smallest (v7x) if query fails
    limit = min(cap * 5 // 8, 96 * 1024 * 1024)
    budget = max(limit - 8 * 1024 * 1024, 16 * 1024 * 1024)
    return budget, limit


def _pick_tile_b(B, S, n_pad, out_itemsize, mm_itemsize, budget):
    """Largest sublane-aligned batch tile that divides B, fits the VMEM budget,
    and (when possible) keeps the grid >= 2 so 'parallel' shards across v7x's
    two TensorCores."""
    per_row = (2 * 2 * n_pad * out_itemsize      # two one-hot output tiles, double-buffered
               + 2 * n_pad * 4                   # two f32 matmul results live at once
               + 2 * S * (4 + mm_itemsize)       # int32 tokens + mm-dtype copies (tiny)
               + 2 * 2 * 128 * 4)                # lane-padded (tB,1) int32 side blocks
    fixed = (2 * S * n_pad * mm_itemsize         # spread (double-buffered allocation)
             + 2 * n_pad * 4                     # cls
             + 4 * 8 * 128 * 4)                  # misc lane-padding slack
    cap = max(8, (budget - fixed) // max(per_row, 1))
    candidates = (1024, 512, 256, 128, 64, 32, 16) if out_itemsize == 2 else \
                 (1024, 512, 256, 128, 64, 32, 16, 8)
    for t in candidates:
        if t <= cap and t <= B // 2 and B % t == 0:
            return t
    # small / odd batch: one full-batch block (always legal; correctness first)
    return B


def fused_combiner(X, solver_out, ext, *, vocab, out_dtype=jnp.bfloat16,
                   pad_idx=PAD_IDX, sep_idx=SEP_IDX, eos_idx=EOS_IDX):
    B, S = X.shape
    N = S * vocab
    assert N < (1 << 24), "S*vocab must stay exactly representable in f32"
    N_pad = ((N + 127) // 128) * 128             # lane-dense unmasked vst

    # bf16 token/spread matmul is exact only for integer ids <= 256
    mm_dtype = jnp.bfloat16 if vocab <= 256 else jnp.float32

    # grid-invariant spread matrix and class-id row, built once on the host side
    j = jnp.arange(N_pad, dtype=jnp.int32)
    spread = (j[None, :] // vocab ==
              jnp.arange(S, dtype=jnp.int32)[:, None]).astype(mm_dtype)   # (S, N_pad)
    cls = jnp.where(j < N, j % vocab, -1).astype(jnp.float32)[None, :]    # (1, N_pad)

    budget, vmem_limit = _vmem_limits()
    tB = _pick_tile_b(B, S, N_pad, jnp.dtype(out_dtype).itemsize,
                      jnp.dtype(mm_dtype).itemsize, budget)

    kernel = functools.partial(_combiner_kernel, pad_idx=pad_idx,
                               sep_idx=sep_idx, eos_idx=eos_idx)
    out_flat, expr_flat, split_i32 = pl.pallas_call(
        kernel,
        out_shape=(
            jax.ShapeDtypeStruct((B, N_pad), out_dtype),    # out_1hot (flat, lane-dense)
            jax.ShapeDtypeStruct((B, N_pad), out_dtype),    # expr_1hot (flat, lane-dense)
            jax.ShapeDtypeStruct((B, 1), jnp.int32),        # splittable
        ),
        grid=(B // tB,),
        in_specs=[
            pl.BlockSpec((tB, S), lambda i: (i, 0)),
            pl.BlockSpec((tB, S), lambda i: (i, 0)),
            pl.BlockSpec((tB, 1), lambda i: (i, 0)),
            pl.BlockSpec((S, N_pad), lambda i: (0, 0)),     # grid-invariant: DMA'd once
            pl.BlockSpec((1, N_pad), lambda i: (0, 0)),     # grid-invariant: DMA'd once
        ],
        out_specs=(
            pl.BlockSpec((tB, N_pad), lambda i: (i, 0)),
            pl.BlockSpec((tB, N_pad), lambda i: (i, 0)),
            pl.BlockSpec((tB, 1), lambda i: (i, 0)),
        ),
        compiler_params=pltpu.CompilerParams(
            dimension_semantics=("parallel",),              # shards over v7x's 2 TCs
            vmem_limit_bytes=vmem_limit,
        ),
    )(X, solver_out, ext, spread, cls)

    if N_pad != N:                                          # strip lane padding (no-op if aligned)
        out_flat = out_flat[:, :N]
        expr_flat = expr_flat[:, :N]
    return out_flat, expr_flat, split_i32


# ----------------------------------------------------------------------------
# Forward pass wrapper.  `final` and `well_formed` are generator-specific
# predicates in the reference code; they are taken as boolean inputs here.
# ----------------------------------------------------------------------------
def neural_combiner_forward(X, solver_out, final, well_formed, *, vocab,
                            out_dtype=jnp.bfloat16):
    B, S = X.shape
    ext = jnp.logical_or(final, jnp.logical_not(well_formed))
    ext = ext.astype(jnp.int32).reshape(B, 1)

    out_flat, expr_flat, split_i32 = fused_combiner(
        X, solver_out, ext, vocab=vocab, out_dtype=out_dtype)

    splittable = split_i32[:, 0].astype(bool)
    valid = splittable & well_formed & jnp.logical_not(final)

    # Free reshapes: (B, S*V) and (B, S, V) share the same row-major layout.
    out_1hot = out_flat.reshape(B, S, vocab)
    expr_1hot = expr_flat.reshape(B, S, vocab)
    # TODO(synk): start_signal = Finder(valid_X, expr_1hot); output = _pool(...)
    #             are stubbed (undefined module / data-dependent serial scatter);
    #             valid rows keep the reference's pre-scatter PAD fill.
    return out_1hot, expr_1hot, splittable, valid


# ----------------------------------------------------------------------------
if __name__ == "__main__":
    key = jax.random.PRNGKey(0)
    B, S, V = 8, 16, 32

    # Random token ids in [3, V) so PAD/SEP/EOS only appear where we place them.
    toks = jax.random.randint(key, (B, S), 3, V, dtype=jnp.int32)
    X = toks

    solver_out = toks
    solver_out = solver_out.at[:, 5].set(SEP_IDX)   # one SEP per row
    solver_out = solver_out.at[:, 9].set(EOS_IDX)   # one EOS per row
    solver_out = solver_out.at[6, 9].set(3)         # row 6: no EOS  -> not splittable
    solver_out = solver_out.at[7, 2].set(SEP_IDX)   # row 7: two SEP -> not splittable

    final = jnp.zeros((B,), dtype=bool).at[0].set(True)
    well_formed = jnp.ones((B,), dtype=bool).at[1].set(False)

    out_1hot, expr_1hot, splittable, valid = neural_combiner_forward(
        X, solver_out, final, well_formed, vocab=V)
    jax.block_until_ready((out_1hot, expr_1hot, splittable, valid))

    # ---- pure-JAX reference --------------------------------------------------
    pos = jnp.arange(S, dtype=jnp.int32)[None, :]
    is_eos = solver_out == EOS_IDX
    is_sep = solver_out == SEP_IDX
    first_eos = jnp.min(jnp.where(is_eos, pos, S), axis=1, keepdims=True)
    splittable_ref = (jnp.sum(is_eos, axis=1) >= 1) & (
        jnp.sum(is_sep & (pos < first_eos), axis=1) == 1)
    keep_ref = final | ~splittable_ref | ~well_formed

    out_tok_ref = jnp.where(keep_ref[:, None], X, PAD_IDX)
    out_1hot_ref = jax.nn.one_hot(out_tok_ref, V, dtype=jnp.float32)

    first_sep = jnp.min(jnp.where(is_sep, pos, S), axis=1, keepdims=True)
    expr_tok_ref = jnp.where(pos < first_sep, solver_out, PAD_IDX)
    expr_1hot_ref = jax.nn.one_hot(expr_tok_ref, V, dtype=jnp.float32)
    expr_1hot_ref = expr_1hot_ref * (expr_tok_ref != PAD_IDX)[:, :, None]

    expected_splittable = jnp.array([1, 1, 1, 1, 1, 1, 0, 0], dtype=bool)
    assert bool(jnp.all(splittable == expected_splittable)), splittable
    assert bool(jnp.all(splittable == splittable_ref)), splittable
    assert bool(jnp.all(valid == (splittable_ref & well_formed & ~final))), valid
    assert bool(jnp.allclose(out_1hot.astype(jnp.float32), out_1hot_ref)), "out_1hot"
    assert bool(jnp.allclose(expr_1hot.astype(jnp.float32), expr_1hot_ref)), "expr_1hot"

    # spot checks
    assert bool(jnp.allclose(out_1hot[0].astype(jnp.float32),
                             jax.nn.one_hot(X[0], V, dtype=jnp.float32)))
    assert bool(jnp.allclose(out_1hot[2].astype(jnp.float32),
                             jax.nn.one_hot(jnp.full((S,), PAD_IDX), V,
                                            dtype=jnp.float32)))
    assert bool(jnp.allclose(expr_1hot[2, 5:].astype(jnp.float32), 0.0))
    assert bool(jnp.allclose(expr_1hot[2, 0].astype(jnp.float32),
                             jax.nn.one_hot(X[2, 0], V, dtype=jnp.float32)))

    print("KERNEL_OK")
</pallas_src>

<mosaic_0001>
module attributes {stable_mosaic.version = 11 : i64} {
  func.func @_combiner_kernel(%arg0: i32, %arg1: memref<8x16xi32, #tpu.memory_space<vmem>>, %arg2: memref<8x16xi32, #tpu.memory_space<vmem>>, %arg3: memref<8x1xi32, #tpu.memory_space<vmem>>, %arg4: memref<16x512xbf16, #tpu.memory_space<vmem>>, %arg5: memref<1x512xf32, #tpu.memory_space<vmem>>, %arg6: memref<8x512xbf16, #tpu.memory_space<vmem>>, %arg7: memref<8x512xbf16, #tpu.memory_space<vmem>>, %arg8: memref<8x1xi32, #tpu.memory_space<vmem>>) attributes {dimension_semantics = [#tpu.dimension_semantics<parallel>], iteration_bounds = array<i64: 1>, scalar_prefetch = 0 : i64, scratch_operands = 0 : i64, tpu.core_type = #tpu.core_type<tc>, window_params = [{transform_indices = @transform_0, window_bounds = array<i64: 8, 16>}, {transform_indices = @transform_1, window_bounds = array<i64: 8, 16>}, {transform_indices = @transform_2, window_bounds = array<i64: 8, 1>}, {pipeline_mode = #tpu.pipeline_mode<synchronous>, transform_indices = @transform_3, window_bounds = array<i64: 16, 512>}, {pipeline_mode = #tpu.pipeline_mode<synchronous>, transform_indices = @transform_4, window_bounds = array<i64: 1, 512>}, {transform_indices = @transform_5, window_bounds = array<i64: 8, 512>}, {transform_indices = @transform_6, window_bounds = array<i64: 8, 512>}, {transform_indices = @transform_7, window_bounds = array<i64: 8, 1>}]} {
    %c0 = arith.constant 0 : index
    %c0_0 = arith.constant 0 : index
    %0 = vector.load %arg1[%c0, %c0_0] : memref<8x16xi32, #tpu.memory_space<vmem>>, vector<8x16xi32>
    %c0_1 = arith.constant 0 : index
    %c0_2 = arith.constant 0 : index
    %1 = vector.load %arg2[%c0_1, %c0_2] : memref<8x16xi32, #tpu.memory_space<vmem>>, vector<8x16xi32>
    %c0_3 = arith.constant 0 : index
    %c0_4 = arith.constant 0 : index
    %2 = vector.load %arg3[%c0_3, %c0_4] : memref<8x1xi32, #tpu.memory_space<vmem>>, vector<8x1xi32>
    %3 = tpu.iota {dimensions = array<i32: 1>} : vector<8x16xi32>
    %c2_i32 = arith.constant 2 : i32
    %4 = vector.broadcast %c2_i32 : i32 to vector<8x16xi32>
    %5 = arith.cmpi eq, %1, %4 : vector<8x16xi32>
    %c1_i32 = arith.constant 1 : i32
    %6 = vector.broadcast %c1_i32 : i32 to vector<8x16xi32>
    %7 = arith.cmpi eq, %1, %6 : vector<8x16xi32>
    %8 = arith.extui %5 : vector<8x16xi1> to vector<8x16xi32>
    %cst = arith.constant dense<0> : vector<8xi32>
    %9 = vector.multi_reduction <add>, %8, %cst [1] : vector<8x16xi32> to vector<8xi32>
    %10 = vector.shape_cast %9 : vector<8xi32> to vector<8x1xi32>
    %c16_i32 = arith.constant 16 : i32
    %11 = vector.broadcast %c16_i32 : i32 to vector<8x16xi32>
    %12 = arith.select %5, %3, %11 : vector<8x16xi1>, vector<8x16xi32>
    %cst_5 = arith.constant dense<2147483647> : vector<8xi32>
    %13 = vector.multi_reduction <minsi>, %12, %cst_5 [1] : vector<8x16xi32> to vector<8xi32>
    %14 = vector.shape_cast %13 : vector<8xi32> to vector<8x1xi32>
    %15 = vector.broadcast %14 : vector<8x1xi32> to vector<8x16xi32>
    %16 = arith.cmpi slt, %3, %15 : vector<8x16xi32>
    %17 = arith.andi %7, %16 : vector<8x16xi1>
    %18 = arith.extui %17 : vector<8x16xi1> to vector<8x16xi32>
    %cst_6 = arith.constant dense<0> : vector<8xi32>
    %19 = vector.multi_reduction <add>, %18, %cst_6 [1] : vector<8x16xi32> to vector<8xi32>
    %20 = vector.shape_cast %19 : vector<8xi32> to vector<8x1xi32>
    %c1_i32_7 = arith.constant 1 : i32
    %21 = vector.broadcast %c1_i32_7 : i32 to vector<8x1xi32>
    %22 = arith.cmpi sge, %10, %21 : vector<8x1xi32>
    %c1_i32_8 = arith.constant 1 : i32
    %23 = vector.broadcast %c1_i32_8 : i32 to vector<8x1xi32>
    %24 = arith.cmpi eq, %20, %23 : vector<8x1xi32>
    %25 = arith.andi %22, %24 : vector<8x1xi1>
    %26 = arith.extui %25 : vector<8x1xi1> to vector<8x1xi32>
    %c0_9 = arith.constant 0 : index
    %c0_10 = arith.constant 0 : index
    %27 = vector.load %arg8[%c0_9, %c0_10] : memref<8x1xi32, #tpu.memory_space<vmem>>, vector<8x1xi32>
    tpu.vector_store %arg8[%c0_9, %c0_10], %26 {strides = array<i32>} : memref<8x1xi32, #tpu.memory_space<vmem>>, vector<8x1xi32>,
    %c0_i32 = arith.constant 0 : i32
    %28 = vector.broadcast %c0_i32 : i32 to vector<8x1xi32>
    %29 = arith.cmpi sgt, %2, %28 : vector<8x1xi32>
    %cst_11 = arith.constant dense<true> : vector<8x1xi1>
    %30 = arith.xori %25, %cst_11 : vector<8x1xi1>
    %31 = arith.ori %29, %30 : vector<8x1xi1>
    %c16_i32_12 = arith.constant 16 : i32
    %32 = vector.broadcast %c16_i32_12 : i32 to vector<8x16xi32>
    %33 = arith.select %7, %3, %32 : vector<8x16xi1>, vector<8x16xi32>
    %cst_13 = arith.constant dense<2147483647> : vector<8xi32>
    %34 = vector.multi_reduction <minsi>, %33, %cst_13 [1] : vector<8x16xi32> to vector<8xi32>
    %35 = vector.shape_cast %34 : vector<8xi32> to vector<8x1xi32>
    %c0_i32_14 = arith.constant 0 : i32
    %36 = vector.shape_cast %31 : vector<8x1xi1> to vector<8x1xi1>
    %37 = vector.broadcast %36 : vector<8x1xi1> to vector<8x16xi1>
    %38 = vector.broadcast %c0_i32_14 : i32 to vector<8x16xi32>
    %39 = arith.select %37, %0, %38 : vector<8x16xi1>, vector<8x16xi32>
    %40 = vector.broadcast %35 : vector<8x1xi32> to vector<8x16xi32>
    %41 = arith.cmpi slt, %3, %40 : vector<8x16xi32>
    %c0_i32_15 = arith.constant 0 : i32
    %42 = vector.broadcast %c0_i32_15 : i32 to vector<8x16xi32>
    %43 = arith.cmpi ne, %1, %42 : vector<8x16xi32>
    %44 = arith.andi %41, %43 : vector<8x16xi1>
    %c-1_i32 = arith.constant -1 : i32
    %45 = vector.broadcast %c-1_i32 : i32 to vector<8x16xi32>
    %46 = arith.select %44, %1, %45 : vector<8x16xi1>, vector<8x16xi32>
    %c0_16 = arith.constant 0 : index
    %c0_17 = arith.constant 0 : index
    %47 = vector.load %arg4[%c0_16, %c0_17] : memref<16x512xbf16, #tpu.memory_space<vmem>>, vector<16x512xbf16>
    %c0_18 = arith.constant 0 : index
    %c0_19 = arith.constant 0 : index
    %48 = vector.load %arg5[%c0_18, %c0_19] : memref<1x512xf32, #tpu.memory_space<vmem>>, vector<1x512xf32>
    %49 = arith.sitofp %39 : vector<8x16xi32> to vector<8x16xbf16>
    %cst_20 = arith.constant dense<0.000000e+00> : vector<8x512xf32>
    %50 = tpu.matmul %49, %47, %cst_20 {dimension_numbers = #tpu.dot_dimension_numbers<[1], [0], [0], [1], [0, 0, 1, 1], [], []>} : vector<8x16xbf16>, vector<16x512xbf16>, vector<8x512xf32> -> vector<8x512xf32>
    %51 = arith.sitofp %46 : vector<8x16xi32> to vector<8x16xbf16>
    %cst_21 = arith.constant dense<0.000000e+00> : vector<8x512xf32>
    %52 = tpu.matmul %51, %47, %cst_21 {dimension_numbers = #tpu.dot_dimension_numbers<[1], [0], [0], [1], [0, 0, 1, 1], [], []>} : vector<8x16xbf16>, vector<16x512xbf16>, vector<8x512xf32> -> vector<8x512xf32>
    %53 = vector.broadcast %48 : vector<1x512xf32> to vector<8x512xf32>
    %54 = arith.cmpf oeq, %50, %53 : vector<8x512xf32>
    %55 = arith.extui %54 : vector<8x512xi1> to vector<8x512xi32>
    %56 = arith.sitofp %55 : vector<8x512xi32> to vector<8x512xf32>
    %57 = arith.truncf %56 : vector<8x512xf32> to vector<8x512xbf16>
    %c0_22 = arith.constant 0 : index
    %c0_23 = arith.constant 0 : index
    %58 = vector.load %arg6[%c0_22, %c0_23] : memref<8x512xbf16, #tpu.memory_space<vmem>>, vector<8x512xbf16>
    tpu.vector_store %arg6[%c0_22, %c0_23], %57 {strides = array<i32>} : memref<8x512xbf16, #tpu.memory_space<vmem>>, vector<8x512xbf16>,
    %59 = vector.broadcast %48 : vector<1x512xf32> to vector<8x512xf32>
    %60 = arith.cmpf oeq, %52, %59 : vector<8x512xf32>
    %61 = arith.extui %60 : vector<8x512xi1> to vector<8x512xi32>
    %62 = arith.sitofp %61 : vector<8x512xi32> to vector<8x512xf32>
    %63 = arith.truncf %62 : vector<8x512xf32> to vector<8x512xbf16>
    %c0_24 = arith.constant 0 : index
    %c0_25 = arith.constant 0 : index
    %64 = vector.load %arg7[%c0_24, %c0_25] : memref<8x512xbf16, #tpu.memory_space<vmem>>, vector<8x512xbf16>
    tpu.vector_store %arg7[%c0_24, %c0_25], %63 {strides = array<i32>} : memref<8x512xbf16, #tpu.memory_space<vmem>>, vector<8x512xbf16>,
    return
  }
  func.func @transform_0(%arg0: i32) -> (i32, i32) {
    %c0_i32 = arith.constant 0 : i32
    %c0_i32_0 = arith.constant 0 : i32
    return %arg0, %c0_i32 : i32, i32
  }
  func.func @transform_1(%arg0: i32) -> (i32, i32) {
    %c0_i32 = arith.constant 0 : i32
    %c0_i32_0 = arith.constant 0 : i32
    return %arg0, %c0_i32 : i32, i32
  }
  func.func @transform_2(%arg0: i32) -> (i32, i32) {
    %c0_i32 = arith.constant 0 : i32
    %c0_i32_0 = arith.constant 0 : i32
    return %arg0, %c0_i32 : i32, i32
  }
  func.func @transform_3(%arg0: i32) -> (i32, i32) {
    %c0_i32 = arith.constant 0 : i32
    %c0_i32_0 = arith.constant 0 : i32
    %c0_i32_1 = arith.constant 0 : i32
    return %c0_i32, %c0_i32_0 : i32, i32
  }
  func.func @transform_4(%arg0: i32) -> (i32, i32) {
    %c0_i32 = arith.constant 0 : i32
    %c0_i32_0 = arith.constant 0 : i32
    %c0_i32_1 = arith.constant 0 : i32
    return %c0_i32, %c0_i32_0 : i32, i32
  }
  func.func @transform_5(%arg0: i32) -> (i32, i32) {
    %c0_i32 = arith.constant 0 : i32
    %c0_i32_0 = arith.constant 0 : i32
    return %arg0, %c0_i32 : i32, i32
  }
  func.func @transform_6(%arg0: i32) -> (i32, i32) {
    %c0_i32 = arith.constant 0 : i32
    %c0_i32_0 = arith.constant 0 : i32
    return %arg0, %c0_i32 : i32, i32
  }
  func.func @transform_7(%arg0: i32) -> (i32, i32) {
    %c0_i32 = arith.constant 0 : i32
    %c0_i32_0 = arith.constant 0 : i32
    return %arg0, %c0_i32 : i32, i32
  }
}

</mosaic_0001>

<bundles_post_ra>
// kernel: tpu_custom_call.1
= control target key start
LH: loop header
LB: loop body
LE: loop exit
PB: predicated region body
PF: predicated region fallthrough
CT: control target
= control target key end

     0   :  { %13 = vsyncpa [#allocation3], 0  ;;  %s693_s0 = inlined_call_operand.vmem [shape: s32[8,16], index: 0, kind: input, shape index: {}]   ;;  %s694_s1 = inlined_call_operand.hbm [shape: s32[8,16], index: 1, kind: input, shape index: {}]   ;;  %s695_s2 = inlined_call_operand.vmem [shape: s32[8,1], index: 2, kind: input, shape index: {}]   ;;  %s696_s3 = inlined_call_operand.hbm [shape: bf16[16,512], index: 3, kind: input, shape index: {}]   ;;  %s697_s4 = inlined_call_operand.vmem [shape: f32[1,512], index: 4, kind: input, shape index: {}]   ;;  %s698_s5 = inlined_call_operand.hbm [shape: bf16[8,512], index: 5, kind: output, shape index: {0}]   ;;  %s699_s6 = inlined_call_operand.hbm [shape: bf16[8,512], index: 6, kind: output, shape index: {1}]   ;;  %s700_s7 = inlined_call_operand.vmem [shape: s32[8,1], index: 7, kind: output, shape index: {2}]  }
   0x1   :  { %14 = vsyncpa [#allocation6], 0 }
   0x2   :  { %15 = vsyncpa [#allocation4], 0 }
   0x3   :  { %16 = vsyncpa [#allocation9], 0  ;;  %s585_s24 = smov [#allocation2]   ;;  %s586_s26 = smov [#allocation5]  }
   0x4   :  { %s25_s25 = sshll.u32 %s585_s24, 4  ;;  %s36_s27 = sshll.u32 %s586_s26, 4  ;;  %s26_s25 = int_to_ptr.vmem [resolvable:$true] %s25_s25  ;;  %s37_s27 = int_to_ptr.vmem [resolvable:$true] %s36_s27 }
   0x5   :  { %s505_s28 = scalar_lea.vmem %s26_s25, 128  ;;  %p510_p1 = scmp.lt.s32.totalorder %s26_s25, %s26_s25 }
   0x6   :  { %p506_p0 = scmp.ne.s32.totalorder %s26_s25, %s505_s28  ;;  %p511_p2 = scmp.lt.s32.totalorder %s505_s28, %s505_s28 }
   0x8   :  { %p512_p3 = por %p511_p2, %p510_p1 }
   0xa   :  { %p513_p4 = pnand %p512_p3, %p506_p0 }
   0xc   :  { %516 = shalt.err (!%p513_p4)
}
   0xd   :  { %28 = dma.hbm_to_vmem [thread:$0]  %s694_s1, 128, %s26_s25, [#allocation3]  }
   0xe   :  { %s525_s8 = scalar_lea.vmem %s37_s27, 512  ;;  %p530_p6 = scmp.lt.s32.totalorder %s37_s27, %s37_s27 }
   0xf   :  { %p526_p5 = scmp.ne.s32.totalorder %s37_s27, %s525_s8  ;;  %p531_p7 = scmp.lt.s32.totalorder %s525_s8, %s525_s8 }
  0x11   :  { %p532_p8 = por %p531_p7, %p530_p6 }
  0x13   :  { %p533_p9 = pnand %p532_p8, %p526_p5 }
  0x15   :  { %536 = shalt.err (!%p533_p9)
}
  0x16   :  { %s587_s9 = smov 256   ;;  %s588_s10 = smov 16  }
  0x17   :  { %42 = dma.hbm_to_vmem [thread:$0]  %s696_s3, 512, %s37_s27, [#allocation6], %s587_s9, %s587_s9, %s588_s10  }
  0x18   :  { %577 = dma.done.wait [#allocation3], 128  }
  0x19   :  { %578 = vsyncadd [#allocation3], 4294967168 }
  0x1a   :  { %579 = dma.done.wait [#allocation6], 512  }
  0x1b   :  { %580 = vsyncadd [#allocation6], 4294966784  ;;  %v55_v0 = vlaneseq  ;;  %v643_v2 = vld [vmem:[#allocation2] sm:$0xff]  ;;  %vm60_vm0 = vcmask 130048   ;;  %v589_v7 = vmov 0   ;;  %vm110_vm8 = vcmask 7168  }
  0x1c   :  { %vm57_vm1 = vcmp.eq.s32.totalorder %v643_v2, 2  ;;  %490 = vset.pattern.permute.xlu0 %v589_v7  ;;  %203 = vmatprep.mubr.bf16.mxu0 %v589_v7  ;;  %vm58_vm2 = vcmp.eq.s32.totalorder %v643_v2, 1  ;;  %v491_v38 = vld [vmem:[#allocation5 + $0x4] ss:$16 sps:$4 sm:$0xff]   ;;  %v493_v39 = vld [vmem:[#allocation5 + $0xc] ss:$16 sps:$4 sm:$0xff]  }
  0x1d   :  { %v641_v1 = vand.u32 127, %v55_v0  ;;  %244 = vmatprep.mubr.bf16.mxu1 %v589_v7  ;;  %v59_v8 = vsel %vm57_vm1, 1, %v589_v7  ;;  %185 = vmatprep.subr.bf16.mxu0 %v491_v38  ;;  %v54_v50 = vld [vmem:[%s695_s2] sm:$0xff]  ;;  %v495_v52 = vld [vmem:[#allocation5] ss:$16 sps:$4 sm:$0xff]   ;;  %vm590_vm12 = vmmov 1  }
  0x1e   :  { %v61_v10 = vsel %vm60_vm0, %v59_v8, 0  ;;  %226 = vmatprep.subr.bf16.mxu1 %v493_v39  ;;  %vm112_vm10 = vcmp.gt.s32.totalorder %v54_v50, 0  ;;  %v496_v53 = vld [vmem:[#allocation5 + $0x8] ss:$16 sps:$4 sm:$0xff]   ;;  %186 = vmatpush1.bf16.msra.mxu0 %v495_v52  ;;  %vm138_vm15 = vcmp.ne.s32.totalorder %v643_v2, 0  ;;  %v342_v8 = vshrl.u32 %v55_v0, 7 }
  0x1f   :  { %v74_v3 = vsel %vm57_vm1, %v641_v1, 16  ;;  %v115_v11 = vsel %vm58_vm2, %v641_v1, 16  ;;  %v62_v13 = vand.u32 65535, %v61_v10  ;;  %v63_v20 = vshrl.u32 %v61_v10, 16  ;;  %227 = vmatpush1.bf16.msra.mxu1 %v496_v53  ;;  %272 = vmatprep.subr.bf16.mxu0 %v491_v38  ;;  %v52_v61 = vld [vmem:[%s693_s0] sm:$0xff]  ;;  %s591_s16 = smov [#allocation7]  }
  0x20   :  { %v75_v4 = vsel %vm60_vm0, %v74_v3, 2147483647  ;;  %v116_v15 = vsel %vm60_vm0, %v115_v11, 2147483647  ;;  %313 = vmatprep.subr.bf16.mxu1 %v493_v39  ;;  %v455_v62 = vcvt.s32.f32 %v52_v61  ;;  %v145_v10 = vld [vmem:[%s697_s4] sm:$0xf] }
  0x21   :  { %v77_v5 = vshra.s32 %v75_v4, 16  ;;  %v76_v9 = vand.u32 65535, %v75_v4  ;;  %v64_v17 = vcvt.s32.f32 %v62_v13  ;;  %v118_v18 = vshra.s32 %v116_v15, 16  ;;  %s427_s17 = sshll.u32 %s591_s16, 4  ;;  %s428_s17 = int_to_ptr.vmem [resolvable:$true] %s427_s17 }
  0x22   :  { %v65_v21 = vcvt.s32.f32 %v63_v20  ;;  %v117_v31 = vand.u32 65535, %v116_v15  ;;  %v347_v11 = vsub.s32 1, %v342_v8  ;;  %v592_v0 = vmov 0.0   ;;  %s537_s4 = scalar_lea.vmem %s428_s17, 256  ;;  %p542_p11 = scmp.lt.s32.totalorder %s428_s17, %s428_s17 }
  0x23   :  { %v79_v6 = vcvt.s32.f32 %v77_v5  ;;  %v78_v12 = vcvt.s32.f32 %v76_v9  ;;  %v120_v19 = vcvt.s32.f32 %v118_v18  ;;  %v343_v9 = vsub.s32 0, %v342_v8  ;;  %p538_p10 = scmp.ne.s32.totalorder %s428_s17, %s537_s4  ;;  %p543_p12 = scmp.lt.s32.totalorder %s537_s4, %s537_s4 }
  0x24   :  { %68 = vadd.xlane.f32.xlu1 %v65_v21  ;;  %v119_v35 = vcvt.s32.f32 %v117_v31  ;;  %v348_v15 = vrot.slane %v145_v10, %v347_v11 }
  0x25   :  { %80 = vmin.xlane.f32.xlu0 %v79_v6  ;;  %v344_v13 = vrot.slane %v145_v10, %v343_v9  ;;  %p544_p13 = por %p543_p12, %p542_p11 }
  0x27   :  { %p545_p0 = pnand %p544_p13, %p538_p10 }
  0xad   :  { %v69_v40 = vpop.xlane.xlu1 %68 }
  0xae   :  { %v81_v14 = vpop.xlane.xlu0 %80  ;;  %v71_v41 = vcvt.f32.s32 %v69_v40 }
  0xaf   :  { %vm82_vm3 = vcmp.eq.f32.partialorder %v79_v6, %v81_v14  ;;  %v87_v22 = vcvt.f32.s32 %v81_v14 }
  0xb0   :  { %v83_v16 = vsel %vm82_vm3, %v78_v12, inf  ;;  %v72_v43 = vshll.u32 %v71_v41, 16  ;;  %v355_v12 = vsub.s32 3, %v342_v8 }
  0xb1   :  { %84 = vmin.xlane.f32.xlu0 %v83_v16  ;;  %v88_v24 = vshll.u32 %v87_v22, 16 }
  0xb2   :  { %v356_v16 = vrot.slane %v145_v10, %v355_v12 }
  0xb5   :  { %66 = vadd.xlane.f32.xlu0 %v64_v17 }
  0xb9   :  { %121 = vmin.xlane.f32.xlu0 %v120_v19 }
 0x13a   :  { %v85_v23 = vpop.xlane.xlu0 %84 }
 0x13b   :  { %v86_v25 = vcvt.f32.s32 %v85_v23 }
 0x13d   :  { %v89_v26 = vadd.s32 %v88_v24, %v86_v25 }
 0x13e   :  { %v67_v27 = vpop.xlane.xlu0 %66 }
 0x13f   :  { %vm90_vm4 = vcmp.lt.s32.totalorder %v641_v1, %v89_v26  ;;  %v70_v42 = vcvt.f32.s32 %v67_v27 }
 0x140   :  { %vm91_vm5 = vmand %vm58_vm2, %vm90_vm4 }
 0x141   :  { %v92_v28 = vsel %vm91_vm5, 1, %v589_v7  ;;  %v73_v46 = vadd.s32 %v72_v43, %v70_v42 }
 0x142   :  { %v93_v29 = vsel %vm60_vm0, %v92_v28, 0  ;;  %v122_v34 = vpop.xlane.xlu0 %121 }
 0x143   :  { %v95_v30 = vshrl.u32 %v93_v29, 16  ;;  %v94_v33 = vand.u32 65535, %v93_v29  ;;  %vm123_vm6 = vcmp.eq.f32.partialorder %v120_v19, %v122_v34  ;;  %vm106_vm7 = vcmp.ge.s32.totalorder %v73_v46, 1 }
 0x144   :  { %v124_v37 = vsel %vm123_vm6, %v119_v35, inf  ;;  %v128_v57 = vcvt.f32.s32 %v122_v34 }
 0x145   :  { %v97_v32 = vcvt.s32.f32 %v95_v30  ;;  %v96_v36 = vcvt.s32.f32 %v94_v33 }
 0x146   :  { %v129_v59 = vshll.u32 %v128_v57, 16 }
 0x147   :  { %100 = vadd.xlane.f32.xlu1 %v97_v32 }
 0x14b   :  { %98 = vadd.xlane.f32.xlu1 %v96_v36 }
 0x14f   :  { %125 = vmin.xlane.f32.xlu1 %v124_v37 }
 0x1d0   :  { %v101_v44 = vpop.xlane.xlu1 %100 }
 0x1d1   :  { %v103_v45 = vcvt.f32.s32 %v101_v44 }
 0x1d3   :  { %v104_v48 = vshll.u32 %v103_v45, 16 }
 0x1d4   :  { %v99_v47 = vpop.xlane.xlu1 %98 }
 0x1d5   :  { %v102_v49 = vcvt.f32.s32 %v99_v47 }
 0x1d7   :  { %v105_v51 = vadd.s32 %v104_v48, %v102_v49 }
 0x1d8   :  { %v126_v56 = vpop.xlane.xlu1 %125 }
 0x1d9   :  { %vm107_vm9 = vcmp.eq.s32.totalorder %v105_v51, 1  ;;  %v127_v58 = vcvt.f32.s32 %v126_v56 }
 0x1da   :  { %vm108_vm11 = vmand %vm106_vm7, %vm107_vm9 }
 0x1db   :  { %v109_v54 = vsel %vm108_vm11, 1, %v589_v7  ;;  %vm113_vm13 = vmxor %vm108_vm11, %vm590_vm12  ;;  %v130_v60 = vadd.s32 %v129_v59, %v127_v58 }
 0x1dc   :  { %111 = vst.msk [vmem:[%s700_s7] sm:$0xff] %vm110_vm8, %v109_v54  ;;  %vm114_vm14 = vmor %vm112_vm10, %vm113_vm13 }
 0x1dd   :  { %v131_v55 = vsel %vm114_vm14, 1, %v589_v7  ;;  %vm137_vm1 = vcmp.lt.s32.totalorder %v641_v1, %v130_v60 }
 0x1de   :  { %133 = vperm.xlu0 %490, %v131_v55   ;;  %vm139_vm2 = vmand %vm137_vm1, %vm138_vm15 }
 0x1df   :  { %v140_v5 = vsel %vm139_vm2, %v643_v2, 4294967295  ;;  %v351_v2 = vsub.s32 2, %v342_v8 }
 0x1e0   :  { %v253_v6 = vcvt.s32.f32 %v140_v5 }
 0x1e1   :  { %v352_v14 = vrot.slane %v145_v10, %v351_v2 }
 0x1e2   :  { %v254_v1 = vpack.c.bf16 %v253_v6, %v253_v6 }
 0x259   :  { %v134_v63 = vpop.permute.xlu0 %133 }
 0x25a   :  { %vm135_vm3 = vcmp.eq.s32.totalorder %v134_v63, 1 }
 0x25b   :  { %v456_v3 = vsel %vm135_vm3, %v455_v62, 0.0 }
 0x25c   :  { %v147_v4 = vpack.c.bf16 %v456_v3, %v456_v3 }
 0x25e   :  { %461 = vmatmul.mubr.msk.bf16.vlgmr.msra.gmra.mxu0 %vm60_vm0, %v147_v4  ;;  %462 = vmatmul.mubr.msk.bf16.vlgmr.msra.gmra.mxu1 %vm60_vm0, %v147_v4 }
 0x25f   :  { %273 = vmatpush1.bf16.msra.mxu0 %v495_v52  ;;  %314 = vmatpush1.bf16.msra.mxu1 %v496_v53 }
 0x260   :  { %290 = vmatprep.mubr.bf16.mxu0 %v589_v7  ;;  %331 = vmatprep.mubr.bf16.mxu1 %v589_v7 }
 0x266   :  { %463 = vmatmul.mubr.msk.bf16.vlgmr.msra.gmra.mxu0 %vm60_vm0, %v254_v1  ;;  %464 = vmatmul.mubr.msk.bf16.vlgmr.msra.gmra.mxu1 %vm60_vm0, %v254_v1 }
 0x31e   :  { %v205_v7 = vpop.f32.mrf.mxu0  ;;  %v246_v17 = vpop.f32.mrf.mxu1 }
 0x31f   :  { %vm361_vm4 = vcmp.eq.f32.partialorder %v205_v7, %v344_v13  ;;  %vm363_vm5 = vcmp.eq.f32.partialorder %v246_v17, %v352_v14 }
 0x320   :  { %v207_v18 = vpop.f32.mrf.mxu0  ;;  %v248_v19 = vpop.f32.mrf.mxu1  ;;  %v465_v20 = vsel %vm361_vm4, 1.0, %v592_v0  ;;  %v467_v21 = vsel %vm363_vm5, 1.0, %v592_v0 }
 0x321   :  { %vm362_vm0 = vcmp.eq.f32.partialorder %v207_v18, %v348_v15  ;;  %vm364_vm6 = vcmp.eq.f32.partialorder %v248_v19, %v356_v16 }
 0x322   :  { %v466_v22 = vsel %vm362_vm0, 1.0, %v592_v0  ;;  %v468_v23 = vsel %vm364_vm6, 1.0, %v592_v0  ;;  %v209_v24 = vpop.f32.mrf.mxu0  ;;  %v250_v25 = vpop.f32.mrf.mxu1 }
 0x323   :  { %v477_v26 = vpack.c.bf16 %v466_v22, %v465_v20  ;;  %v478_v27 = vpack.c.bf16 %v468_v23, %v467_v21 }
 0x324   :  { %v210_v28 = vpop.f32.mrf.mxu0  ;;  %v251_v29 = vpop.f32.mrf.mxu1 }
 0x325   :  { %389 = vst [vmem:[#allocation7] sm:$0xff] %v477_v26  ;;  %390 = vst [vmem:[#allocation7 + $0x8] sm:$0xff] %v478_v27 }
 0x326   :  { %v292_v30 = vpop.f32.mrf.mxu0  ;;  %v333_v31 = vpop.f32.mrf.mxu1 }
 0x327   :  { %548 = shalt.err (!%p545_p0)
}
 0x328   :  { %430 = dma.vmem_to_hbm [thread:$0]  %s428_s17, 256, %s698_s5, [#allocation4]   ;;  %vm391_vm7 = vcmp.eq.f32.partialorder %v292_v30, %v344_v13  ;;  %vm393_vm8 = vcmp.eq.f32.partialorder %v333_v31, %v352_v14  ;;  %v294_v32 = vpop.f32.mrf.mxu0  ;;  %v335_v33 = vpop.f32.mrf.mxu1 }
 0x329   :  { %s593_s20 = smov [#allocation8]   ;;  %vm392_vm9 = vcmp.eq.f32.partialorder %v294_v32, %v348_v15  ;;  %vm394_vm10 = vcmp.eq.f32.partialorder %v335_v33, %v356_v16  ;;  %v471_v34 = vsel %vm391_vm7, 1.0, %v592_v0  ;;  %v473_v35 = vsel %vm393_vm8, 1.0, %v592_v0 }
 0x32a   :  { %s437_s21 = sshll.u32 %s593_s20, 4  ;;  %v472_v36 = vsel %vm392_vm9, 1.0, %v592_v0  ;;  %v474_v37 = vsel %vm394_vm10, 1.0, %v592_v0  ;;  %v296_v38 = vpop.f32.mrf.mxu0  ;;  %v337_v39 = vpop.f32.mrf.mxu1  ;;  %s438_s21 = int_to_ptr.vmem [resolvable:$true] %s437_s21 }
 0x32b   :  { %v479_v40 = vpack.c.bf16 %v472_v36, %v471_v34  ;;  %v480_v41 = vpack.c.bf16 %v474_v37, %v473_v35  ;;  %s557_s5 = scalar_lea.vmem %s438_s21, 256  ;;  %p562_p2 = scmp.lt.s32.totalorder %s438_s21, %s438_s21 }
 0x32c   :  { %v297_v42 = vpop.f32.mrf.mxu0  ;;  %v338_v43 = vpop.f32.mrf.mxu1  ;;  %p558_p1 = scmp.ne.s32.totalorder %s438_s21, %s557_s5  ;;  %p563_p3 = scmp.lt.s32.totalorder %s557_s5, %s557_s5 }
 0x32d   :  { %419 = vst [vmem:[#allocation8] sm:$0xff] %v479_v40  ;;  %420 = vst [vmem:[#allocation8 + $0x8] sm:$0xff] %v480_v41 }
 0x32e   :  { %p564_p4 = por %p563_p3, %p562_p2 }
 0x330   :  { %p565_p5 = pnand %p564_p4, %p558_p1 }
 0x332   :  { %568 = shalt.err (!%p565_p5)
}
 0x333   :  { %440 = dma.vmem_to_hbm [thread:$0]  %s438_s21, 256, %s699_s6, [#allocation9]  }
 0x334   :  { %581 = dma.done.wait [#allocation4], 256  }
 0x335   :  { %582 = vsyncadd [#allocation4], 4294967040 }
 0x336   :  { %583 = dma.done.wait [#allocation9], 256  }
 0x337   :  { %584 = vsyncadd [#allocation9], 4294967040 }
 0x338   :  { %451 = vsyncpa [#allocation3], 1 }
 0x339   :  { %452 = vsyncpa [#allocation6], 1 }
 0x33a   :  { %453 = vsyncpa [#allocation4], 1 }
 0x33b   :  { %454 = vsyncpa [#allocation9], 1 }

</bundles_post_ra>
